<compile_context>
chip_gen: v5e
topology: v5e:2x2
jax: 0.10.0
libtpu: 0.0.40
codegen_flags: <defaults>
</compile_context>

<pallas_src>
import jax
import jax.numpy as jnp
from jax.experimental import pallas as pl
from jax.experimental.pallas import tpu as pltpu


def _attention_kernel(x_ref, wq_ref, wk_ref, wv_ref, wout_ref, bout_ref,
                      o_ref, acc_ref):
    """One (batch, head) grid step: this head's contribution to the output
    projection is accumulated into a f32 VMEM scratch; bias is added and the
    result stored on the last head."""
    h = pl.program_id(1)

    @pl.when(h == 0)
    def _():
        acc_ref[...] = jnp.zeros_like(acc_ref)

    x = x_ref[0]                        # (N, D)   bf16
    wq = wq_ref[0]                      # (D, Dh)  bf16  (scale pre-folded)
    wk = wk_ref[0]                      # (D, Dh)  bf16
    wv = wv_ref[0]                      # (D, Dh)  bf16
    wo = wout_ref[0]                    # (Dh, D)  bf16

    # --- per-head q/k/v projections (MXU, f32 accumulation) ---
    q = jnp.dot(x, wq, preferred_element_type=jnp.float32).astype(jnp.bfloat16)
    k = jnp.dot(x, wk, preferred_element_type=jnp.float32).astype(jnp.bfloat16)
    v = jnp.dot(x, wv, preferred_element_type=jnp.float32).astype(jnp.bfloat16)

    # --- scores = (q * scale) @ k^T  (scale already folded into wq) ---
    scores = jax.lax.dot_general(
        q, k, dimension_numbers=(((1,), (1,)), ((), ())),
        preferred_element_type=jnp.float32)                       # (N, N) f32

    # --- numerically-stable softmax in f32; normalization deferred ---
    m = jnp.max(scores, axis=-1, keepdims=True)
    p = jnp.exp(scores - m)                                       # (N, N) f32
    inv_denom = pl.reciprocal(jnp.sum(p, axis=-1, keepdims=True), approx=True)

    # out_h = softmax @ v, normalized on the small (N, Dh) side.
    out_h = jnp.dot(p.astype(jnp.bfloat16), v,
                    preferred_element_type=jnp.float32) * inv_denom  # (N, Dh)

    # --- fused output projection: acc += out_h @ w_out[h] ---
    acc_ref[...] += jnp.dot(out_h.astype(jnp.bfloat16), wo,
                            preferred_element_type=jnp.float32)

    @pl.when(h == pl.num_programs(1) - 1)
    def _():
        o_ref[0] = (acc_ref[...] + bout_ref[...]).astype(o_ref.dtype)


def attention_pallas(x, w_qkv, w_out, b_out, *, heads, dim_head):
    """x: (B, N, D) f32; w_qkv: (D, 3*heads*dim_head); w_out: (heads*dim_head, D);
    b_out: (1, D).  Weights stored as (in_features, out_features): y = x @ W + b."""
    B, N, D = x.shape
    inner = heads * dim_head
    scale = dim_head ** (-0.5)

    # ---- host-side weight rearrangement (one-time, free at runtime) ----
    w_q, w_k, w_v = jnp.split(w_qkv, 3, axis=-1)          # each (D, inner)

    def to_head_major(w):                                  # (D, inner) -> (heads, D, Dh)
        return w.reshape(D, heads, dim_head).transpose(1, 0, 2)

    w_q = (to_head_major(w_q) * scale).astype(jnp.bfloat16)   # fold scale into q
    w_k = to_head_major(w_k).astype(jnp.bfloat16)
    w_v = to_head_major(w_v).astype(jnp.bfloat16)
    w_o = w_out.reshape(heads, dim_head, D).astype(jnp.bfloat16)  # (heads, Dh, D)
    x_bf16 = x.astype(jnp.bfloat16)
    b_out_f32 = b_out.astype(jnp.float32)

    flops = (2 * B * N * D * 3 * inner                    # qkv projections
             + 2 * B * heads * N * N * dim_head * 2       # scores + attn@v
             + 2 * B * N * inner * D)                     # output projection
    bytes_accessed = (x_bf16.size * 2 + (w_q.size + w_k.size + w_v.size) * 2
                      + w_o.size * 2 + b_out_f32.size * 4 + B * N * D * 4)
    cost = pl.CostEstimate(flops=flops,
                           transcendentals=B * heads * N * N,
                           bytes_accessed=bytes_accessed)

    return pl.pallas_call(
        _attention_kernel,
        out_shape=jax.ShapeDtypeStruct((B, N, D), x.dtype),
        grid_spec=pltpu.PrefetchScalarGridSpec(
            num_scalar_prefetch=0,
            grid=(B, heads),
            in_specs=[
                pl.BlockSpec((1, N, D), lambda b, h: (b, 0, 0)),         # x
                pl.BlockSpec((1, D, dim_head), lambda b, h: (h, 0, 0)),  # w_q
                pl.BlockSpec((1, D, dim_head), lambda b, h: (h, 0, 0)),  # w_k
                pl.BlockSpec((1, D, dim_head), lambda b, h: (h, 0, 0)),  # w_v
                pl.BlockSpec((1, dim_head, D), lambda b, h: (h, 0, 0)),  # w_out
                pl.BlockSpec((1, D), lambda b, h: (0, 0)),               # b_out
            ],
            out_specs=pl.BlockSpec((1, N, D), lambda b, h: (b, 0, 0)),
            scratch_shapes=[pltpu.VMEM((N, D), jnp.float32)],            # f32 accumulator
        ),
        compiler_params=pltpu.CompilerParams(
            dimension_semantics=("parallel", "arbitrary"),
            vmem_limit_bytes=32 * 1024 * 1024),
        cost_estimate=cost,
    )(x_bf16, w_q, w_k, w_v, w_o, b_out_f32)


def attention_reference(x, w_qkv, w_out, b_out, *, heads, dim_head):
    """Pure-JAX f32 reference mirroring the PyTorch forward (mask=None)."""
    B, N, D = x.shape
    inner = heads * dim_head
    scale = dim_head ** (-0.5)
    qkv = x @ w_qkv                                        # (B, N, 3*inner)
    q, k, v = jnp.split(qkv, 3, axis=-1)

    def to_heads(t):                                       # 'b n (h d) -> b h n d'
        return t.reshape(B, N, heads, dim_head).transpose(0, 2, 1, 3)

    q, k, v = map(to_heads, (q, k, v))
    dots = jnp.einsum('bhid,bhjd->bhij', q, k) * scale
    attn = jax.nn.softmax(dots, axis=-1)
    out = jnp.einsum('bhij,bhjd->bhid', attn, v)
    out = out.transpose(0, 2, 1, 3).reshape(B, N, inner)   # 'b h n d -> b n (h d)'
    return out @ w_out + b_out[0]


if __name__ == "__main__":
    # Small shapes consistent with the module's forward.
    B, N, D = 2, 8, 32
    heads, dim_head = 4, 8
    inner = heads * dim_head

    key = jax.random.PRNGKey(0)
    kx, kqkv, kout, kb = jax.random.split(key, 4)

    x = jax.random.normal(kx, (B, N, D), dtype=jnp.float32)
    w_qkv = 0.02 * jax.random.normal(kqkv, (D, 3 * inner), dtype=jnp.float32)
    w_out = 0.02 * jax.random.normal(kout, (inner, D), dtype=jnp.float32)
    b_out = 0.02 * jax.random.normal(kb, (1, D), dtype=jnp.float32)

    y = attention_pallas(x, w_qkv, w_out, b_out, heads=heads, dim_head=dim_head)
    y = jax.block_until_ready(y)

    y_ref = attention_reference(x, w_qkv, w_out, b_out,
                                heads=heads, dim_head=dim_head)
    assert y.shape == (B, N, D)
    # bf16 matmul inputs + EUP approx reciprocal -> relaxed (but meaningful) tolerance.
    assert jnp.allclose(y, y_ref, atol=5e-3, rtol=5e-2), "mismatch vs reference"

    print("KERNEL_OK")
</pallas_src>

<mosaic_0001>
module attributes {stable_mosaic.version = 11 : i64} {
  func.func @_attention_kernel(%arg0: i32, %arg1: i32, %arg2: memref<1x8x32xbf16, #tpu.memory_space<vmem>>, %arg3: memref<1x32x8xbf16, #tpu.memory_space<vmem>>, %arg4: memref<1x32x8xbf16, #tpu.memory_space<vmem>>, %arg5: memref<1x32x8xbf16, #tpu.memory_space<vmem>>, %arg6: memref<1x8x32xbf16, #tpu.memory_space<vmem>>, %arg7: memref<1x32xf32, #tpu.memory_space<vmem>>, %arg8: memref<1x8x32xf32, #tpu.memory_space<vmem>>, %arg9: memref<8x32xf32, #tpu.memory_space<vmem>>) attributes {dimension_semantics = [#tpu.dimension_semantics<parallel>, #tpu.dimension_semantics<arbitrary>], iteration_bounds = array<i64: 2, 4>, scalar_prefetch = 0 : i64, scratch_operands = 1 : i64, tpu.core_type = #tpu.core_type<tc>, window_params = [{transform_indices = @transform_0, window_bounds = array<i64: 1, 8, 32>}, {transform_indices = @transform_1, window_bounds = array<i64: 1, 32, 8>}, {transform_indices = @transform_2, window_bounds = array<i64: 1, 32, 8>}, {transform_indices = @transform_3, window_bounds = array<i64: 1, 32, 8>}, {transform_indices = @transform_4, window_bounds = array<i64: 1, 8, 32>}, {pipeline_mode = #tpu.pipeline_mode<synchronous>, transform_indices = @transform_5, window_bounds = array<i64: 1, 32>}, {transform_indices = @transform_6, window_bounds = array<i64: 1, 8, 32>}]} {
    %c0_i32 = arith.constant 0 : i32
    %0 = arith.cmpi eq, %arg1, %c0_i32 : i32
    %1 = arith.extui %0 : i1 to i32
    %c0_i32_0 = arith.constant 0 : i32
    %2 = arith.cmpi ne, %1, %c0_i32_0 : i32
    scf.if %2 {
      %cst_27 = arith.constant 0.000000e+00 : f32
      %40 = vector.broadcast %cst_27 : f32 to vector<8x32xf32>
      %c0_28 = arith.constant 0 : index
      %c0_29 = arith.constant 0 : index
      %41 = vector.load %arg9[%c0_28, %c0_29] : memref<8x32xf32, #tpu.memory_space<vmem>>, vector<8x32xf32>
      tpu.vector_store %arg9[%c0_28, %c0_29], %40 {strides = array<i32>} : memref<8x32xf32, #tpu.memory_space<vmem>>, vector<8x32xf32>,
    } else {
    }
    %c0 = arith.constant 0 : index
    %c0_1 = arith.constant 0 : index
    %c0_2 = arith.constant 0 : index
    %3 = vector.load %arg2[%c0, %c0_1, %c0_2] : memref<1x8x32xbf16, #tpu.memory_space<vmem>>, vector<1x8x32xbf16>
    %4 = vector.shape_cast %3 : vector<1x8x32xbf16> to vector<8x32xbf16>
    %c0_3 = arith.constant 0 : index
    %c0_4 = arith.constant 0 : index
    %c0_5 = arith.constant 0 : index
    %5 = vector.load %arg3[%c0_3, %c0_4, %c0_5] : memref<1x32x8xbf16, #tpu.memory_space<vmem>>, vector<1x32x8xbf16>
    %6 = vector.shape_cast %5 : vector<1x32x8xbf16> to vector<32x8xbf16>
    %c0_6 = arith.constant 0 : index
    %c0_7 = arith.constant 0 : index
    %c0_8 = arith.constant 0 : index
    %7 = vector.load %arg4[%c0_6, %c0_7, %c0_8] : memref<1x32x8xbf16, #tpu.memory_space<vmem>>, vector<1x32x8xbf16>
    %8 = vector.shape_cast %7 : vector<1x32x8xbf16> to vector<32x8xbf16>
    %c0_9 = arith.constant 0 : index
    %c0_10 = arith.constant 0 : index
    %c0_11 = arith.constant 0 : index
    %9 = vector.load %arg5[%c0_9, %c0_10, %c0_11] : memref<1x32x8xbf16, #tpu.memory_space<vmem>>, vector<1x32x8xbf16>
    %10 = vector.shape_cast %9 : vector<1x32x8xbf16> to vector<32x8xbf16>
    %c0_12 = arith.constant 0 : index
    %c0_13 = arith.constant 0 : index
    %c0_14 = arith.constant 0 : index
    %11 = vector.load %arg6[%c0_12, %c0_13, %c0_14] : memref<1x8x32xbf16, #tpu.memory_space<vmem>>, vector<1x8x32xbf16>
    %12 = vector.shape_cast %11 : vector<1x8x32xbf16> to vector<8x32xbf16>
    %cst = arith.constant dense<0.000000e+00> : vector<8x8xf32>
    %13 = tpu.matmul %4, %6, %cst {dimension_numbers = #tpu.dot_dimension_numbers<[1], [0], [0], [1], [0, 0, 1, 1], [], []>} : vector<8x32xbf16>, vector<32x8xbf16>, vector<8x8xf32> -> vector<8x8xf32>
    %14 = arith.truncf %13 : vector<8x8xf32> to vector<8x8xbf16>
    %cst_15 = arith.constant dense<0.000000e+00> : vector<8x8xf32>
    %15 = tpu.matmul %4, %8, %cst_15 {dimension_numbers = #tpu.dot_dimension_numbers<[1], [0], [0], [1], [0, 0, 1, 1], [], []>} : vector<8x32xbf16>, vector<32x8xbf16>, vector<8x8xf32> -> vector<8x8xf32>
    %16 = arith.truncf %15 : vector<8x8xf32> to vector<8x8xbf16>
    %cst_16 = arith.constant dense<0.000000e+00> : vector<8x8xf32>
    %17 = tpu.matmul %4, %10, %cst_16 {dimension_numbers = #tpu.dot_dimension_numbers<[1], [0], [0], [1], [0, 0, 1, 1], [], []>} : vector<8x32xbf16>, vector<32x8xbf16>, vector<8x8xf32> -> vector<8x8xf32>
    %18 = arith.truncf %17 : vector<8x8xf32> to vector<8x8xbf16>
    %cst_17 = arith.constant dense<0.000000e+00> : vector<8x8xf32>
    %19 = tpu.matmul %14, %16, %cst_17 {dimension_numbers = #tpu.dot_dimension_numbers<[1], [1], [0], [0], [0, 0, 1, 0], [], []>} : vector<8x8xbf16>, vector<8x8xbf16>, vector<8x8xf32> -> vector<8x8xf32>
    %cst_18 = arith.constant dense<0xFF800000> : vector<8xf32>
    %20 = vector.multi_reduction <maximumf>, %19, %cst_18 [1] : vector<8x8xf32> to vector<8xf32>
    %21 = vector.shape_cast %20 : vector<8xf32> to vector<8x1xf32>
    %22 = vector.broadcast %21 : vector<8x1xf32> to vector<8x8xf32>
    %23 = arith.subf %19, %22 : vector<8x8xf32>
    %24 = math.exp %23 : vector<8x8xf32>
    %cst_19 = arith.constant dense<0.000000e+00> : vector<8xf32>
    %25 = vector.multi_reduction <add>, %24, %cst_19 [1] : vector<8x8xf32> to vector<8xf32>
    %26 = vector.shape_cast %25 : vector<8xf32> to vector<8x1xf32>
    %27 = tpu.reciprocal %26 {approx = true} : vector<8x1xf32> -> vector<8x1xf32>
    %28 = arith.truncf %24 : vector<8x8xf32> to vector<8x8xbf16>
    %cst_20 = arith.constant dense<0.000000e+00> : vector<8x8xf32>
    %29 = tpu.matmul %28, %18, %cst_20 {dimension_numbers = #tpu.dot_dimension_numbers<[1], [0], [0], [1], [0, 0, 1, 1], [], []>} : vector<8x8xbf16>, vector<8x8xbf16>, vector<8x8xf32> -> vector<8x8xf32>
    %30 = vector.broadcast %27 : vector<8x1xf32> to vector<8x8xf32>
    %31 = arith.mulf %29, %30 : vector<8x8xf32>
    %c0_21 = arith.constant 0 : index
    %c0_22 = arith.constant 0 : index
    %32 = vector.load %arg9[%c0_21, %c0_22] : memref<8x32xf32, #tpu.memory_space<vmem>>, vector<8x32xf32>
    %33 = arith.truncf %31 : vector<8x8xf32> to vector<8x8xbf16>
    %cst_23 = arith.constant dense<0.000000e+00> : vector<8x32xf32>
    %34 = tpu.matmul %33, %12, %cst_23 {dimension_numbers = #tpu.dot_dimension_numbers<[1], [0], [0], [1], [0, 0, 1, 1], [], []>} : vector<8x8xbf16>, vector<8x32xbf16>, vector<8x32xf32> -> vector<8x32xf32>
    %35 = arith.addf %32, %34 : vector<8x32xf32>
    %c0_24 = arith.constant 0 : index
    %c0_25 = arith.constant 0 : index
    %36 = vector.load %arg9[%c0_24, %c0_25] : memref<8x32xf32, #tpu.memory_space<vmem>>, vector<8x32xf32>
    tpu.vector_store %arg9[%c0_24, %c0_25], %35 {strides = array<i32>} : memref<8x32xf32, #tpu.memory_space<vmem>>, vector<8x32xf32>,
    %c3_i32 = arith.constant 3 : i32
    %37 = arith.cmpi eq, %arg1, %c3_i32 : i32
    %38 = arith.extui %37 : i1 to i32
    %c0_i32_26 = arith.constant 0 : i32
    %39 = arith.cmpi ne, %38, %c0_i32_26 : i32
    scf.if %39 {
      %c0_27 = arith.constant 0 : index
      %c0_28 = arith.constant 0 : index
      %40 = vector.load %arg9[%c0_27, %c0_28] : memref<8x32xf32, #tpu.memory_space<vmem>>, vector<8x32xf32>
      %c0_29 = arith.constant 0 : index
      %c0_30 = arith.constant 0 : index
      %41 = vector.load %arg7[%c0_29, %c0_30] : memref<1x32xf32, #tpu.memory_space<vmem>>, vector<1x32xf32>
      %42 = vector.broadcast %41 : vector<1x32xf32> to vector<8x32xf32>
      %43 = arith.addf %40, %42 : vector<8x32xf32>
      %c0_31 = arith.constant 0 : index
      %c0_32 = arith.constant 0 : index
      %c0_33 = arith.constant 0 : index
      %44 = vector.load %arg8[%c0_31, %c0_32, %c0_33] : memref<1x8x32xf32, #tpu.memory_space<vmem>>, vector<1x8x32xf32>
      %45 = vector.shape_cast %44 : vector<1x8x32xf32> to vector<8x32xf32>
      %46 = vector.shape_cast %43 : vector<8x32xf32> to vector<1x8x32xf32>
      tpu.vector_store %arg8[%c0_31, %c0_32, %c0_33], %46 {strides = array<i32>} : memref<1x8x32xf32, #tpu.memory_space<vmem>>, vector<1x8x32xf32>,
    } else {
    }
    return
  }
  func.func @transform_0(%arg0: i32, %arg1: i32) -> (i32, i32, i32) {
    %c0_i32 = arith.constant 0 : i32
    %c0_i32_0 = arith.constant 0 : i32
    %c0_i32_1 = arith.constant 0 : i32
    return %arg0, %c0_i32, %c0_i32_0 : i32, i32, i32
  }
  func.func @transform_1(%arg0: i32, %arg1: i32) -> (i32, i32, i32) {
    %c0_i32 = arith.constant 0 : i32
    %c0_i32_0 = arith.constant 0 : i32
    %c0_i32_1 = arith.constant 0 : i32
    return %arg1, %c0_i32, %c0_i32_0 : i32, i32, i32
  }
  func.func @transform_2(%arg0: i32, %arg1: i32) -> (i32, i32, i32) {
    %c0_i32 = arith.constant 0 : i32
    %c0_i32_0 = arith.constant 0 : i32
    %c0_i32_1 = arith.constant 0 : i32
    return %arg1, %c0_i32, %c0_i32_0 : i32, i32, i32
  }
  func.func @transform_3(%arg0: i32, %arg1: i32) -> (i32, i32, i32) {
    %c0_i32 = arith.constant 0 : i32
    %c0_i32_0 = arith.constant 0 : i32
    %c0_i32_1 = arith.constant 0 : i32
    return %arg1, %c0_i32, %c0_i32_0 : i32, i32, i32
  }
  func.func @transform_4(%arg0: i32, %arg1: i32) -> (i32, i32, i32) {
    %c0_i32 = arith.constant 0 : i32
    %c0_i32_0 = arith.constant 0 : i32
    %c0_i32_1 = arith.constant 0 : i32
    return %arg1, %c0_i32, %c0_i32_0 : i32, i32, i32
  }
  func.func @transform_5(%arg0: i32, %arg1: i32) -> (i32, i32) {
    %c0_i32 = arith.constant 0 : i32
    %c0_i32_0 = arith.constant 0 : i32
    %c0_i32_1 = arith.constant 0 : i32
    return %c0_i32, %c0_i32_0 : i32, i32
  }
  func.func @transform_6(%arg0: i32, %arg1: i32) -> (i32, i32, i32) {
    %c0_i32 = arith.constant 0 : i32
    %c0_i32_0 = arith.constant 0 : i32
    %c0_i32_1 = arith.constant 0 : i32
    return %arg0, %c0_i32, %c0_i32_0 : i32, i32, i32
  }
}

</mosaic_0001>

<bundles_post_ra>
// kernel: tpu_custom_call.1
= control target key start
LH: loop header
LB: loop body
LE: loop exit
PB: predicated region body
PF: predicated region fallthrough
CT: control target
= control target key end

     0   :  { %11 = vsyncpa [#allocation4], 0  ;;  %s1088_s0 = inlined_call_operand.vmem [shape: bf16[2,8,32], index: 0, kind: input, shape index: {}]   ;;  %s1089_s1 = inlined_call_operand.vmem [shape: bf16[4,32,8], index: 1, kind: input, shape index: {}]   ;;  %s1090_s2 = inlined_call_operand.vmem [shape: bf16[4,32,8], index: 2, kind: input, shape index: {}]   ;;  %s1091_s3 = inlined_call_operand.vmem [shape: bf16[4,32,8], index: 3, kind: input, shape index: {}]   ;;  %s1092_s4 = inlined_call_operand.vmem [shape: bf16[4,8,32], index: 4, kind: input, shape index: {}]   ;;  %s1093_s5 = inlined_call_operand.vmem [shape: f32[1,32], index: 5, kind: input, shape index: {}]   ;;  %s1094_s6 = inlined_call_operand.hbm [shape: f32[2,8,32], index: 6, kind: output, shape index: {}]  }
   0x1   :  { %13 = vsyncpa [#allocation4 + $0x1], 0  ;;  %s927_s21 = smov 0   ;;  %s929_s22 = smov 0  }
   0x2   :  { %s931_s23 = smov 0   ;;  %s933_s24 = smov 0  }
   0x3   :  { %s935_s25 = smov 0   ;;  %s937_s26 = smov 0  }
   0x4   :  { %s939_s27 = smov 0   ;;  %s941_s28 = smov 0  }
   0x5 LB: > { %1104 = sst [smem:[#allocation6_spill]] %s861_s21  ;;  %s659_s29 = sadd.s32 4294967295, %s889_s28   ;;  %s889_s28 = sphi %s941_s28, %s19_s28   ;;  %s885_s27 = sphi %s939_s27, %s1124_s27   ;;  %s881_s26 = sphi %s937_s26, %s1128_s26   ;;  %s877_s25 = sphi %s935_s25, %s1122_s25   ;;  %s873_s24 = sphi %s933_s24, %s1121_s24   ;;  %s869_s23 = sphi %s931_s23, %s1127_s23   ;;  %s865_s22 = sphi %s929_s22, %s1126_s22   ;;  %s861_s21 = sphi %s927_s21, %s1125_s21  }
   0x6   : > { %1105 = sst [smem:[#allocation7_spill]] %s869_s23  ;;  %s660_s30 = sadd.s32 4294967294, %s889_s28  }
   0x7   : > { %1106 = sst [smem:[#allocation8_spill]] %s881_s26  ;;  %s28_s7 = sadd.s32 1, %s881_s26 }
   0x8   : > { %1107 = sst [smem:[#allocation9_spill]] %s885_s27  ;;  %p29_p0 = scmp.ge.s32.totalorder %s28_s7, 4 }
   0x9   : > { %1108 = sst [smem:[#allocation10_spill]] %s889_s28  ;;  %s31_s8 = sadd.s32 1, %s885_s27 }
   0xa   : > { %p199_p1 = scmp.ne.s32.totalorder %s869_s23, %s865_s22  ;;  %p200_p2 = scmp.eq.s32.totalorder %s659_s29, 7 }
   0xb   : > { %s1130_s7 = smov (%p29_p0, %s28_s7), 0  ;;  %s1132_s8 = smov (!%p29_p0, %s31_s8), %s885_s27 }
   0xc   : > { %1109 = sst [smem:[#allocation11_spill]] %s1130_s7  ;;  %p976_p3 = por %p200_p2, %p199_p1 }
   0xd   : > { %p205_p4 = scmp.ne.s32.totalorder %s865_s22, %s861_s21  ;;  %p33_p5 = scmp.ge.s32.totalorder %s1132_s8, 2 }
   0xe   : > { %p206_p6 = scmp.eq.s32.totalorder %s660_s30, 7  ;;  %p663_p7 = scmp.ge.s32.totalorder %s889_s28, 1 }
   0xf   : > { %p265_p8 = scmp.lt.s32.totalorder %s889_s28, 9  ;;  %s1134_s8 = smov (%p33_p5, %s1132_s8), 0 }
  0x10   : > { %1111 = sst [smem:[#allocation12_spill]] %s1134_s8  ;;  %p986_p9 = por %p206_p6, %p205_p4 }
  0x11   : > { %p266_p10 = pnand %p663_p7, %p265_p8  ;;  %s186_s11 = ssub.s32 %s885_s27, %s1134_s8 }
  0x12   : > { %s1112_s10 = scalar_select %p986_p9, 1, 0 }
  0x13   : > { %s189_s12 = sadd.s32 1, %s869_s23  ;;  %p187_p11 = scmp.eq.s32.totalorder %s186_s11, 0 }
  0x14   : > { %1113 = sst [smem:[#allocation13_spill]] %s1112_s10  ;;  %269 = sbr.rel (%p266_p10) target bundleno = 725 (0x2d5), region = 44 }
  0x15   : > { %s994_s13 = scalar_select %p187_p11, %s869_s23, %s189_s12  }
  0x16   : > { %s1098_s14 = sand.u32 (!%p266_p10), 1, %s865_s22   ;;  %p313_p12 = scmp.lt.s32.totalorder (!%p266_p10), %s877_s25, 1 }
  0x17   : > { %1114 = sst [smem:[#allocation14_spill]] %s994_s13  ;;  %s1000_s15 = sshll.u32 (!%p266_p10), %s1098_s14, 3 }
  0x18   : > { %p317_p13 = scmp.lt.s32.totalorder (!%p266_p10), %s873_s24, 3  ;;  %p673_p0 = scmp.ne.s32.totalorder (!%p266_p10), %s873_s24, 0 }
  0x19   : > { %s314_s16 = scalar_select %p313_p12, %s877_s25, 1 }
  0x1a   : > { %s318_s17 = scalar_select %p317_p13, %s873_s24, 3 }
  0x1b   : > { %s665_s18 = sshll.u32 %s314_s16, 2  ;;  %340 = sbr.rel (%p673_p0) target bundleno = 34 (0x22), region = 48 }
  0x1c   : > { %s316_s29 = scalar_lea.vmem %s1088_s0, %s665_s18  ;;  %s709_s30 = sshll.u32 %s318_s17, 4 }
  0x1d   : > { %s321_s8 = scalar_lea.vmem %s1089_s1, %s709_s30  ;;  %s326_s26 = scalar_lea.vmem %s1090_s2, %s709_s30 }
  0x1e   : > { %s331_s23 = scalar_lea.vmem %s1091_s3, %s709_s30  ;;  %s672_s10 = sshll.u32 %s318_s17, 2 }
  0x1f   : > { %s1020_s28 = scalar_lea.vmem %s1092_s4, %s672_s10  ;;  %s312_s18 = scalar_lea.vmem [#allocation3], %s1000_s15 }
  0x20   : > { %vm341_vm0 = vcmask 261120   ;;  %v891_v0 = vmov 0.0  }
  0x21   : > { %342 = vst.msk [vmem:[#allocation2] sm:$0xff] %vm341_vm0, %v891_v0 }
  0x22 PF: > { %v713_v1 = vld [vmem:[%s321_s8 + $0x8] sm:$0xff]  ;;  %v712_v3 = vld [vmem:[%s321_s8] sm:$0xff]  ;;  %vm369_vm1 = vcmask 261120   ;;  %vm439_vm2 = vcmask 64512   ;;  %vm473_vm3 = vcmask 1043456   ;;  %p704_p1 = scmp.ne.s32.totalorder %s873_s24, 3 }
  0x23   : > { %v715_v2 = vld [vmem:[%s326_s26 + $0x8] sm:$0xff]  ;;  %379 = vmatpush.bf16.msra.mxu0 %v713_v1  ;;  %v714_v4 = vld [vmem:[%s326_s26] sm:$0xff] }
  0x24   : > { %405 = vmatpush.bf16.msra.mxu1 %v715_v2  ;;  %v343_v5 = vld [vmem:[%s316_s29] sm:$0xf]  ;;  %v717_v6 = vld [vmem:[%s331_s23 + $0x8] sm:$0xff] }
  0x25   : > { %431 = vmatpush.bf16.msra.mxu2 %v717_v6  ;;  %v716_v7 = vld [vmem:[%s331_s23] sm:$0xff] }
  0x26   : > { %v356_v22 = vld [vmem:[%s1020_s28] sm:$0xf] }
  0x27   : > { %380 = vmatpush.bf16.msra.mxu0 %v712_v3  ;;  %v497_v23 = vsel %vm473_vm3, %v356_v22, 0 }
  0x28   : > { %406 = vmatpush.bf16.msra.mxu1 %v714_v4  ;;  %v491_v36 = vld [vmem:[#allocation2] sm:$0xff] }
  0x29   : > { %432 = vmatpush.bf16.msra.mxu2 %v716_v7 }
  0x2a   : > { %682 = vmatmul.msk.bf16.vlgmr.msra.gmra.mxu0 %vm369_vm1, %v343_v5 }
  0x2b   : > { %691 = vmatmul.msk.bf16.vlgmr.msra.gmra.mxu1 %vm369_vm1, %v343_v5 }
  0x2c   : > { %700 = vmatmul.msk.bf16.vlgmr.msra.gmra.mxu2 %vm369_vm1, %v343_v5  ;;  %506 = vmatpush.bf16.msrb.mxu1 %v497_v23 }
  0xa7   : > { %v382_v8 = vpop.f32.mrf.mxu0 }
  0xa8   : > { %v408_v9 = vpop.f32.mrf.mxu1  ;;  %v386_v12 = vpack.c.bf16 %v382_v8, %v382_v8 }
  0xa9   : > { %v412_v10 = vpack.c.bf16 %v408_v9, %v408_v9 }
  0xab   : > { %v444_v11 = vsel %vm439_vm2, %v412_v10, 0 }
  0xac   : > { %453 = vmatpush.bf16.xpose.msra.mxu3 %v444_v11 }
  0xaf   : > { %v384_v13 = vpop.f32.mrf.mxu0  ;;  %v434_v15 = vpop.f32.mrf.mxu2 }
  0xb0   : > { %v410_v14 = vpop.f32.mrf.mxu1  ;;  %v438_v16 = vpack.c.bf16 %v434_v15, %v434_v15 }
  0xb2   : > { %v475_v17 = vsel %vm473_vm3, %v438_v16, 0 }
  0xb3   : > { %701 = vmatmul.msk.bf16.vlgmr.msra.gmra.mxu3 %vm439_vm2, %v386_v12  ;;  %484 = vmatpush.bf16.msrb.mxu0 %v475_v17 }
  0xb7   : > { %v436_v18 = vpop.f32.mrf.mxu2 }
 0x136   : > { %v455_v19 = vpop.f32.mrf.mxu3 }
 0x137   : > { %v459_v20 = vsel %vm439_vm2, %v455_v19, -inf }
 0x138   : > { %460 = vmax.xlane.f32.xlu0 %v459_v20 }
 0x13e   : > { %v457_v21 = vpop.f32.mrf.mxu3 }
 0x1ab   : > { %v461_v24 = vpop.xlane.xlu0 %460 }
 0x1ac   : > { %v462_v25 = vsub.f32 %v455_v19, %v461_v24 }
 0x1ae   : > { %v463_v26 = vmul.f32 1.442695, %v462_v25 }
 0x1b0   : > { %790 = vpow2.f32 %v463_v26 }
 0x1b6   : > { %v791_v27 = vpop.eup %790 }
 0x1b7   : > { %v465_v28 = vsel %vm439_vm2, %v791_v27, 0.0  ;;  %v469_v29 = vpack.c.bf16 %v791_v27, %v791_v27 }
 0x1b8   : > { %466 = vadd.xlane.f32.xlu0 %v465_v28 }
 0x1b9   : > { %702 = vmatmul.msk.bf16.vlgmr.msrb.gmra.mxu0 %vm439_vm2, %v469_v29 }
 0x22b   : > { %v467_v30 = vpop.xlane.xlu0 %466 }
 0x22c   : > { %792 = vrcp.f32 %v467_v30 }
 0x232   : > { %v793_v31 = vpop.eup %792 }
 0x236   : > { %v486_v32 = vpop.f32.mrf.mxu0 }
 0x237   : > { %v490_v33 = vmul.f32 %v793_v31, %v486_v32 }
 0x239   : > { %v492_v34 = vpack.c.bf16 %v490_v33, %v490_v33 }
 0x23b   : > { %703 = vmatmul.msk.bf16.vlgmr.msrb.gmra.mxu1 %vm439_vm2, %v492_v34 }
 0x23e   : > { %v488_v35 = vpop.f32.mrf.mxu0 }
 0x2b8   : > { %v508_v37 = vpop.f32.mrf.mxu1 }
 0x2b9   : > { %v512_v38 = vadd.f32 %v508_v37, %v491_v36 }
 0x2bb   : > { %513 = vst.msk [vmem:[#allocation2] sm:$0xff] %vm369_vm1, %v512_v38 }
 0x2bc   : > { %517 = sbr.rel (%p704_p1) target bundleno = 710 (0x2c6), region = 52 }
 0x2c0   : > { %v510_v39 = vpop.f32.mrf.mxu1 }
 0x2c1   : > { %v794_v41 = vld [vmem:[%s1093_s5] ss:$0 sm:$0xff] }
 0x2c2   : > { %v518_v40 = vld [vmem:[#allocation2] sm:$0xff] }
 0x2c3   : > { %v523_v42 = vadd.f32 %v794_v41, %v518_v40 }
 0x2c5   : > { %524 = vst.msk [vmem:[%s312_s18] sm:$0xff] %vm369_vm1, %v523_v42 }
 0x2c6 PF: > { %s706_s26 = sshll.u32 %s877_s25, 3  ;;  %s538_s7 = sshll.u32 %s312_s18, 4  ;;  %s539_s7 = int_to_ptr.vmem [resolvable:$true] %s538_s7 }
 0x2c7   : > { %s536_s24 = scalar_lea.hbm %s1094_s6, %s706_s26  ;;  %s1115_s10 = sand.u32 1, %s865_s22  }
 0x2c8   : > { %s540_s8 = sshll.u32 %s536_s24, 4  ;;  %s526_s13 = scalar_lea.sflag [#allocation4], %s1115_s10  ;;  %s541_s8 = int_to_ptr.hbm [resolvable:$true] %s540_s8 }
 0x2c9   : > { %s809_s14 = sshra.s32 %s541_s8, 4  ;;  %s815_s20 = scalar_lea.hbm %s1094_s6, 16  ;;  %s810_s14 = int_to_ptr.hbm [resolvable:$true] %s809_s14 }
 0x2ca   : > { %s811_s17 = scalar_lea.hbm %s810_s14, 8  ;;  %p816_p6 = scmp.lt.s32.totalorder %s810_s14, %s1094_s6 }
 0x2cb   : > { %p812_p2 = scmp.ne.s32.totalorder %s810_s14, %s811_s17  ;;  %p817_p7 = scmp.lt.s32.totalorder %s815_s20, %s811_s17 }
 0x2cd   : > { %p813_p4 = pnand %p812_p2, %p976_p3  ;;  %p818_p8 = por %p817_p7, %p816_p6 }
 0x2cf   : > { %p814_p5 = pneg %p813_p4 }
 0x2d1   : > { %p819_p10 = pnand %p818_p8, %p814_p5 }
 0x2d3   : > { %822 = shalt.err (!%p819_p10)
}
 0x2d4   : > { %718 = dma.vmem_to_hbm [thread:$0]  (%p976_p3), %s539_s7, 128, %s541_s8, %s526_s13  }
 0x2d5 PF: > { %s1116_s15 = sld [smem:[#allocation10_spill]] }
 0x2d6   : > { %s1117_s11 = sld [smem:[#allocation6_spill]] }
 0x2db   : > { %p724_p11 = scmp.ge.s32.totalorder %s1116_s15, 2 }
 0x2dc   : > { %s552_s16 = sand.u32 1, %s1117_s11  }
 0x2dd   : > { %p721_p12 = pnand %p724_p11, %p986_p9  ;;  %s553_s18 = scalar_lea.sflag [#allocation4], %s552_s16 }
 0x2df   : > { %p722_p13 = pneg %p721_p12 }
 0x2e1   : > { %856 = dma.done.wait (%p722_p13), %s553_s18, 128  }
 0x2e2   : > { %858 = vsyncadd (%p722_p13), %s553_s18, 4294967168  ;;  %s19_s28 = sadd.s32 1, %s1116_s15   ;;  %s1119_s23 = sld [smem:[#allocation7_spill]] }
 0x2e3   : > { %p16_p0 = scmp.ge.s32.totalorder %s19_s28, 10   ;;  %s1120_s26 = sld [smem:[#allocation14_spill]] }
 0x2e4   : > { %s1121_s24 = sld [smem:[#allocation8_spill]]  ;;  %s1125_s21 = smov %s865_s22 }
 0x2e5   : > { %s1122_s25 = sld [smem:[#allocation9_spill]] }
 0x2e6   : > { %s1123_s9 = sld [smem:[#allocation11_spill]] }
 0x2e7   : > { %s1124_s27 = sld [smem:[#allocation12_spill]] }
 0x2e8   : > { %s1126_s22 = smov %s1119_s23  ;;  %18 = sbr.rel (!%p16_p0) target bundleno = 5 (0x5), region = 99 }
 0x2e9   : > { %s1127_s23 = smov %s1120_s26 }
 0x2ec   : > { %s1128_s26 = smov %s1123_s9 }
 0x2ed   :  { %559 = vsyncpa [#allocation4], 1 }
 0x2ee   :  { %561 = vsyncpa [#allocation4 + $0x1], 1 }

</bundles_post_ra>
